<compile_context>
chip_gen: v7x
topology: tpu7x:2x2x1
jax: 0.10.0
libtpu: 0.0.40
codegen_flags: <defaults>
</compile_context>

<pallas_src>
import numpy as np
import jax
import jax.numpy as jnp
from jax import lax
from jax.experimental import pallas as pl
from jax.experimental.pallas import tpu as pltpu

HIDDEN = 64      # hidden width of both RNN layers (matches the PyTorch module)
TC_MAX = 128     # time-chunk size; amortizes ~600-cycle grid-step overhead
UNROLL = 8       # partial unroll of the in-kernel recurrence loop


def _make_kernel(Tc, TB, D, H, n_chunks, tail_steps):
    """Builds the kernel closed over the static tiling parameters."""

    def kernel(x_ref,                        # (Tc, TB, D)  time-major chunk
               w1i_ref, w1h_ref, b1_ref,     # (D,H), (H,H), (1,H)
               w2i_ref, w2h_ref, b2_ref,     # (H,H), (H,H), (1,H)
               wf_ref, bf_ref,               # (1,H), SMEM (1,)
               out_ref,                      # (TB, 1)
               a1_scr, h1_scr, h2_scr):      # VMEM (Tc,TB,H), (TB,H), (TB,H)
        chunk = pl.program_id(1)

        @pl.when(chunk == 0)
        def _():
            h1_scr[...] = jnp.zeros_like(h1_scr)
            h2_scr[...] = jnp.zeros_like(h2_scr)

        # Hoisted layer-1 input projection for the whole chunk: one big MXU
        # matmul (M = Tc*TB) instead of Tc tiny ones on the serial path.
        # Stored to VMEM scratch so the loop does a cheap leading-axis load.
        a1 = jnp.dot(x_ref[...].reshape(Tc * TB, D), w1i_ref[...],
                     preferred_element_type=jnp.float32) + b1_ref[...]
        a1_scr[...] = a1.reshape(Tc, TB, H)

        # Hoist weight loads / bias broadcast out of the recurrence
        # (JAX does not CSE broadcast_in_dim).
        w1h = w1h_ref[...]
        w2i = w2i_ref[...]
        w2h = w2h_ref[...]
        b2 = jnp.broadcast_to(b2_ref[...], (TB, H))

        def step(t, carry):
            h1, h2 = carry
            h1 = jnp.maximum(
                a1_scr[t] + jnp.dot(h1, w1h, preferred_element_type=jnp.float32),
                0.0)
            # Two accumulating K=64 matmuls instead of a per-step lane concat
            # + one K=128 matmul (drops the XLU shuffle every iteration).
            h2 = jnp.maximum(
                jnp.dot(h1, w2i, preferred_element_type=jnp.float32)
                + jnp.dot(h2, w2h, preferred_element_type=jnp.float32)
                + b2,
                0.0)
            return (h1, h2)

        def run(n_steps):
            h1, h2 = lax.fori_loop(0, n_steps, step,
                                   (h1_scr[...], h2_scr[...]),
                                   unroll=UNROLL)
            h1_scr[...] = h1
            h2_scr[...] = h2

        if tail_steps == Tc:
            run(Tc)                          # every chunk is full
        else:
            # Fixed Tc + statically-bounded tail: the trailing x rows of the
            # last (partial) chunk are never read by the recurrence.
            @pl.when(chunk < n_chunks - 1)
            def _():
                run(Tc)

            @pl.when(chunk == n_chunks - 1)
            def _():
                run(tail_steps)

        @pl.when(chunk == n_chunks - 1)
        def _():
            # fc (N=1) on the VPU/XLU: row-weight multiply + lane reduce
            # instead of a 1-lane MXU matmul with a masked (64,1) tile.
            logits = jnp.sum(h2_scr[...] * wf_ref[...], axis=-1,
                             keepdims=True) + bf_ref[0]
            out_ref[...] = jax.nn.sigmoid(logits)

    return kernel


def rnn_model_forward(x, params):
    """x: (B, T, D) float32, batch_first (same as the PyTorch module)."""
    B, T, D = x.shape
    H = HIDDEN

    # Batch tiling: pad to the f32 sublane multiple (8).  For padded batch
    # >= 16, add a leading "parallel" batch-grid axis so v7x's two
    # TensorCores each take half the batch (size-1 axis otherwise).
    if B <= 8:
        Bp, TB = 8, 8
    else:
        Bp = -(-B // 16) * 16
        TB = Bp // 2
    NB = Bp // TB

    # Fixed time-chunk size; the tail is bounded inside the kernel.
    Tc = min(T, TC_MAX)
    n_chunks = -(-T // Tc)
    tail_steps = T - (n_chunks - 1) * Tc

    # Time-major layout: one 2|x| HBM transpose outside the kernel buys a
    # contiguous a1_scr[t] load on every step of the serial recurrence
    # (BlockSpec cannot permute dims, so keeping (B,T,D) would force a
    # per-chunk in-kernel relayout or a strided per-step gather instead).
    x_tbd = jnp.transpose(x, (1, 0, 2)).astype(jnp.float32)   # (T, B, D)
    if Bp != B:
        x_tbd = jnp.pad(x_tbd, ((0, 0), (0, Bp - B), (0, 0)))

    (w1_ih, w1_hh, b1_ih, b1_hh,
     w2_ih, w2_hh, b2_ih, b2_hh,
     w_fc, b_fc) = params

    # Pre-transpose weights -> kernel does (B,K)@(K,N); fold paired RNN biases.
    w1i = jnp.transpose(w1_ih).astype(jnp.float32)             # (D, H)
    w1h = jnp.transpose(w1_hh).astype(jnp.float32)             # (H, H)
    b1 = (b1_ih + b1_hh).reshape(1, H).astype(jnp.float32)     # (1, H)
    w2i = jnp.transpose(w2_ih).astype(jnp.float32)             # (H, H)
    w2h = jnp.transpose(w2_hh).astype(jnp.float32)             # (H, H)
    b2 = (b2_ih + b2_hh).reshape(1, H).astype(jnp.float32)     # (1, H)
    wf = w_fc.reshape(1, H).astype(jnp.float32)                # (1, H) row
    bf = b_fc.reshape(1).astype(jnp.float32)                   # (1,) -> SMEM

    def _const(shape):
        return pl.BlockSpec(shape, lambda b, i: (0, 0))

    # Per-generation VMEM budget: double-buffered x chunk + a1 scratch +
    # weights.  Only raise the scoped limit when the conservative defaults
    # (16 MiB on v5e) would not admit it; cap well under v7x's 64 MiB.
    est = (2 * Tc * TB * D * 4 + Tc * TB * H * 4
           + 2 * (D * H + 3 * H * H + 3 * H) * 4 + 4 * TB * H * 4)
    vmem_limit = None
    if est > (12 << 20):
        vmem_limit = min(int(est * 1.5) + (2 << 20), 48 << 20)

    kernel = _make_kernel(Tc, TB, D, H, n_chunks, tail_steps)
    out = pl.pallas_call(
        kernel,
        out_shape=jax.ShapeDtypeStruct((Bp, 1), jnp.float32),
        grid=(NB, n_chunks),
        in_specs=[
            pl.BlockSpec((Tc, TB, D), lambda b, i: (i, b, 0)),  # stream x over T
            _const((D, H)),
            _const((H, H)),
            _const((1, H)),
            _const((H, H)),
            _const((H, H)),
            _const((1, H)),
            _const((1, H)),
            pl.BlockSpec(memory_space=pltpu.MemorySpace.SMEM),
        ],
        out_specs=pl.BlockSpec((TB, 1), lambda b, i: (b, 0)),
        scratch_shapes=[pltpu.VMEM((Tc, TB, H), jnp.float32),   # a1 chunk
                        pltpu.VMEM((TB, H), jnp.float32),       # h1 carry
                        pltpu.VMEM((TB, H), jnp.float32)],      # h2 carry
        compiler_params=pltpu.CompilerParams(
            dimension_semantics=("parallel", "arbitrary"),
            vmem_limit_bytes=vmem_limit),
    )(x_tbd, w1i, w1h, b1, w2i, w2h, b2, wf, bf)
    return out[:B]


def init_params(key, input_dim):
    """Deterministic init matching PyTorch shapes; uniform(-1/sqrt(H), 1/sqrt(H))."""
    ks = jax.random.split(key, 10)
    bound = 1.0 / np.sqrt(HIDDEN)
    u = lambda k, shape: jax.random.uniform(k, shape, jnp.float32, -bound, bound)
    w1_ih = u(ks[0], (HIDDEN, input_dim))
    w1_hh = u(ks[1], (HIDDEN, HIDDEN))
    b1_ih = u(ks[2], (HIDDEN,))
    b1_hh = u(ks[3], (HIDDEN,))
    w2_ih = u(ks[4], (HIDDEN, HIDDEN))
    w2_hh = u(ks[5], (HIDDEN, HIDDEN))
    b2_ih = u(ks[6], (HIDDEN,))
    b2_hh = u(ks[7], (HIDDEN,))
    w_fc = u(ks[8], (1, HIDDEN))
    b_fc = u(ks[9], (1,))
    return (w1_ih, w1_hh, b1_ih, b1_hh,
            w2_ih, w2_hh, b2_ih, b2_hh,
            w_fc, b_fc)


def reference_forward(x, params):
    """Pure-JAX reference implementing the PyTorch forward (eval mode).

    Recurrent matmuls use the default TPU precision (same as the kernel);
    the final fc uses HIGHEST so it matches the kernel's full-f32 VPU fc.
    """
    (w1_ih, w1_hh, b1_ih, b1_hh,
     w2_ih, w2_hh, b2_ih, b2_hh,
     w_fc, b_fc) = params
    B, T, D = x.shape
    h1 = jnp.zeros((B, HIDDEN), jnp.float32)
    h2 = jnp.zeros((B, HIDDEN), jnp.float32)
    for t in range(T):
        x_t = x[:, t, :]
        h1 = jax.nn.relu(x_t @ w1_ih.T + b1_ih + h1 @ w1_hh.T + b1_hh)
        h2 = jax.nn.relu(h1 @ w2_ih.T + b2_ih + h2 @ w2_hh.T + b2_hh)
    logits = jnp.dot(h2, w_fc.T, precision=lax.Precision.HIGHEST) + b_fc
    return jax.nn.sigmoid(logits)


if __name__ == "__main__":
    B, T, D = 2, 8, 16
    key = jax.random.PRNGKey(0)
    kx, kp = jax.random.split(key)
    x = jax.random.normal(kx, (B, T, D), jnp.float32)
    params = init_params(kp, D)

    out = rnn_model_forward(x, params)
    out = jax.block_until_ready(out)

    ref = reference_forward(x, params)
    np.testing.assert_allclose(np.asarray(out), np.asarray(ref),
                               rtol=1e-4, atol=1e-5)
    print("KERNEL_OK")
</pallas_src>

<mosaic_0001>
module attributes {stable_mosaic.version = 11 : i64} {
  func.func @kernel(%arg0: i32, %arg1: i32, %arg2: memref<8x8x16xf32, #tpu.memory_space<vmem>>, %arg3: memref<16x64xf32, #tpu.memory_space<vmem>>, %arg4: memref<64x64xf32, #tpu.memory_space<vmem>>, %arg5: memref<1x64xf32, #tpu.memory_space<vmem>>, %arg6: memref<64x64xf32, #tpu.memory_space<vmem>>, %arg7: memref<64x64xf32, #tpu.memory_space<vmem>>, %arg8: memref<1x64xf32, #tpu.memory_space<vmem>>, %arg9: memref<1x64xf32, #tpu.memory_space<vmem>>, %arg10: memref<1xf32, #tpu.memory_space<smem>>, %arg11: memref<8x1xf32, #tpu.memory_space<vmem>>, %arg12: memref<8x8x64xf32, #tpu.memory_space<vmem>>, %arg13: memref<8x64xf32, #tpu.memory_space<vmem>>, %arg14: memref<8x64xf32, #tpu.memory_space<vmem>>) attributes {dimension_semantics = [#tpu.dimension_semantics<parallel>, #tpu.dimension_semantics<arbitrary>], iteration_bounds = array<i64: 1, 1>, scalar_prefetch = 0 : i64, scratch_operands = 3 : i64, tpu.core_type = #tpu.core_type<tc>, window_params = [{transform_indices = @transform_0, window_bounds = array<i64: 8, 8, 16>}, {pipeline_mode = #tpu.pipeline_mode<synchronous>, transform_indices = @transform_1, window_bounds = array<i64: 16, 64>}, {pipeline_mode = #tpu.pipeline_mode<synchronous>, transform_indices = @transform_2, window_bounds = array<i64: 64, 64>}, {pipeline_mode = #tpu.pipeline_mode<synchronous>, transform_indices = @transform_3, window_bounds = array<i64: 1, 64>}, {pipeline_mode = #tpu.pipeline_mode<synchronous>, transform_indices = @transform_4, window_bounds = array<i64: 64, 64>}, {pipeline_mode = #tpu.pipeline_mode<synchronous>, transform_indices = @transform_5, window_bounds = array<i64: 64, 64>}, {pipeline_mode = #tpu.pipeline_mode<synchronous>, transform_indices = @transform_6, window_bounds = array<i64: 1, 64>}, {pipeline_mode = #tpu.pipeline_mode<synchronous>, transform_indices = @transform_7, window_bounds = array<i64: 1, 64>}, {transform_indices = @transform_8, window_bounds = array<i64: 1>}, {transform_indices = @transform_9, window_bounds = array<i64: 8, 1>}]} {
    %c0_i32 = arith.constant 0 : i32
    %0 = arith.cmpi eq, %arg1, %c0_i32 : i32
    %1 = arith.extui %0 : i1 to i32
    %c0_i32_0 = arith.constant 0 : i32
    %2 = arith.cmpi ne, %1, %c0_i32_0 : i32
    scf.if %2 {
      %cst_85 = arith.constant 0.000000e+00 : f32
      %129 = vector.broadcast %cst_85 : f32 to vector<8x64xf32>
      %c0_86 = arith.constant 0 : index
      %c0_87 = arith.constant 0 : index
      %130 = vector.load %arg13[%c0_86, %c0_87] : memref<8x64xf32, #tpu.memory_space<vmem>>, vector<8x64xf32>
      tpu.vector_store %arg13[%c0_86, %c0_87], %129 {strides = array<i32>} : memref<8x64xf32, #tpu.memory_space<vmem>>, vector<8x64xf32>,
      %cst_88 = arith.constant 0.000000e+00 : f32
      %131 = vector.broadcast %cst_88 : f32 to vector<8x64xf32>
      %c0_89 = arith.constant 0 : index
      %c0_90 = arith.constant 0 : index
      %132 = vector.load %arg14[%c0_89, %c0_90] : memref<8x64xf32, #tpu.memory_space<vmem>>, vector<8x64xf32>
      tpu.vector_store %arg14[%c0_89, %c0_90], %131 {strides = array<i32>} : memref<8x64xf32, #tpu.memory_space<vmem>>, vector<8x64xf32>,
    } else {
    }
    %c0 = arith.constant 0 : index
    %c0_1 = arith.constant 0 : index
    %c0_2 = arith.constant 0 : index
    %3 = vector.load %arg2[%c0, %c0_1, %c0_2] : memref<8x8x16xf32, #tpu.memory_space<vmem>>, vector<8x8x16xf32>
    %4 = vector.shape_cast %3 : vector<8x8x16xf32> to vector<64x16xf32>
    %c0_3 = arith.constant 0 : index
    %c0_4 = arith.constant 0 : index
    %5 = vector.load %arg3[%c0_3, %c0_4] : memref<16x64xf32, #tpu.memory_space<vmem>>, vector<16x64xf32>
    %cst = arith.constant dense<0.000000e+00> : vector<64x64xf32>
    %6 = tpu.matmul %4, %5, %cst {dimension_numbers = #tpu.dot_dimension_numbers<[1], [0], [0], [1], [0, 0, 1, 1], [], []>} : vector<64x16xf32>, vector<16x64xf32>, vector<64x64xf32> -> vector<64x64xf32>
    %c0_5 = arith.constant 0 : index
    %c0_6 = arith.constant 0 : index
    %7 = vector.load %arg5[%c0_5, %c0_6] : memref<1x64xf32, #tpu.memory_space<vmem>>, vector<1x64xf32>
    %8 = vector.broadcast %7 : vector<1x64xf32> to vector<64x64xf32>
    %9 = arith.addf %6, %8 : vector<64x64xf32>
    %10 = vector.shape_cast %9 : vector<64x64xf32> to vector<8x8x64xf32>
    %c0_7 = arith.constant 0 : index
    %c0_8 = arith.constant 0 : index
    %c0_9 = arith.constant 0 : index
    %11 = vector.load %arg12[%c0_7, %c0_8, %c0_9] : memref<8x8x64xf32, #tpu.memory_space<vmem>>, vector<8x8x64xf32>
    tpu.vector_store %arg12[%c0_7, %c0_8, %c0_9], %10 {strides = array<i32>} : memref<8x8x64xf32, #tpu.memory_space<vmem>>, vector<8x8x64xf32>,
    %c0_10 = arith.constant 0 : index
    %c0_11 = arith.constant 0 : index
    %12 = vector.load %arg4[%c0_10, %c0_11] : memref<64x64xf32, #tpu.memory_space<vmem>>, vector<64x64xf32>
    %c0_12 = arith.constant 0 : index
    %c0_13 = arith.constant 0 : index
    %13 = vector.load %arg6[%c0_12, %c0_13] : memref<64x64xf32, #tpu.memory_space<vmem>>, vector<64x64xf32>
    %c0_14 = arith.constant 0 : index
    %c0_15 = arith.constant 0 : index
    %14 = vector.load %arg7[%c0_14, %c0_15] : memref<64x64xf32, #tpu.memory_space<vmem>>, vector<64x64xf32>
    %c0_16 = arith.constant 0 : index
    %c0_17 = arith.constant 0 : index
    %15 = vector.load %arg8[%c0_16, %c0_17] : memref<1x64xf32, #tpu.memory_space<vmem>>, vector<1x64xf32>
    %16 = vector.shape_cast %15 : vector<1x64xf32> to vector<1x64xf32>
    %17 = vector.broadcast %16 : vector<1x64xf32> to vector<8x64xf32>
    %c0_18 = arith.constant 0 : index
    %c0_19 = arith.constant 0 : index
    %18 = vector.load %arg13[%c0_18, %c0_19] : memref<8x64xf32, #tpu.memory_space<vmem>>, vector<8x64xf32>
    %c0_20 = arith.constant 0 : index
    %c0_21 = arith.constant 0 : index
    %19 = vector.load %arg14[%c0_20, %c0_21] : memref<8x64xf32, #tpu.memory_space<vmem>>, vector<8x64xf32>
    %c0_i32_22 = arith.constant 0 : i32
    %20 = arith.index_cast %c0_i32_22 : i32 to index
    %c0_23 = arith.constant 0 : index
    %c0_24 = arith.constant 0 : index
    %21 = vector.load %arg12[%20, %c0_23, %c0_24] : memref<8x8x64xf32, #tpu.memory_space<vmem>>, vector<1x8x64xf32>
    %22 = vector.shape_cast %21 : vector<1x8x64xf32> to vector<8x64xf32>
    %cst_25 = arith.constant dense<0.000000e+00> : vector<8x64xf32>
    %23 = tpu.matmul %18, %12, %cst_25 {dimension_numbers = #tpu.dot_dimension_numbers<[1], [0], [0], [1], [0, 0, 1, 1], [], []>} : vector<8x64xf32>, vector<64x64xf32>, vector<8x64xf32> -> vector<8x64xf32>
    %24 = arith.addf %22, %23 : vector<8x64xf32>
    %cst_26 = arith.constant 0.000000e+00 : f32
    %25 = vector.broadcast %cst_26 : f32 to vector<8x64xf32>
    %26 = arith.maximumf %24, %25 : vector<8x64xf32>
    %cst_27 = arith.constant dense<0.000000e+00> : vector<8x64xf32>
    %27 = tpu.matmul %26, %13, %cst_27 {dimension_numbers = #tpu.dot_dimension_numbers<[1], [0], [0], [1], [0, 0, 1, 1], [], []>} : vector<8x64xf32>, vector<64x64xf32>, vector<8x64xf32> -> vector<8x64xf32>
    %cst_28 = arith.constant dense<0.000000e+00> : vector<8x64xf32>
    %28 = tpu.matmul %19, %14, %cst_28 {dimension_numbers = #tpu.dot_dimension_numbers<[1], [0], [0], [1], [0, 0, 1, 1], [], []>} : vector<8x64xf32>, vector<64x64xf32>, vector<8x64xf32> -> vector<8x64xf32>
    %29 = arith.addf %27, %28 : vector<8x64xf32>
    %30 = arith.addf %29, %17 : vector<8x64xf32>
    %cst_29 = arith.constant 0.000000e+00 : f32
    %31 = vector.broadcast %cst_29 : f32 to vector<8x64xf32>
    %32 = arith.maximumf %30, %31 : vector<8x64xf32>
    %c1_i32 = arith.constant 1 : i32
    %33 = arith.index_cast %c1_i32 : i32 to index
    %c0_30 = arith.constant 0 : index
    %c0_31 = arith.constant 0 : index
    %34 = vector.load %arg12[%33, %c0_30, %c0_31] : memref<8x8x64xf32, #tpu.memory_space<vmem>>, vector<1x8x64xf32>
    %35 = vector.shape_cast %34 : vector<1x8x64xf32> to vector<8x64xf32>
    %cst_32 = arith.constant dense<0.000000e+00> : vector<8x64xf32>
    %36 = tpu.matmul %26, %12, %cst_32 {dimension_numbers = #tpu.dot_dimension_numbers<[1], [0], [0], [1], [0, 0, 1, 1], [], []>} : vector<8x64xf32>, vector<64x64xf32>, vector<8x64xf32> -> vector<8x64xf32>
    %37 = arith.addf %35, %36 : vector<8x64xf32>
    %cst_33 = arith.constant 0.000000e+00 : f32
    %38 = vector.broadcast %cst_33 : f32 to vector<8x64xf32>
    %39 = arith.maximumf %37, %38 : vector<8x64xf32>
    %cst_34 = arith.constant dense<0.000000e+00> : vector<8x64xf32>
    %40 = tpu.matmul %39, %13, %cst_34 {dimension_numbers = #tpu.dot_dimension_numbers<[1], [0], [0], [1], [0, 0, 1, 1], [], []>} : vector<8x64xf32>, vector<64x64xf32>, vector<8x64xf32> -> vector<8x64xf32>
    %cst_35 = arith.constant dense<0.000000e+00> : vector<8x64xf32>
    %41 = tpu.matmul %32, %14, %cst_35 {dimension_numbers = #tpu.dot_dimension_numbers<[1], [0], [0], [1], [0, 0, 1, 1], [], []>} : vector<8x64xf32>, vector<64x64xf32>, vector<8x64xf32> -> vector<8x64xf32>
    %42 = arith.addf %40, %41 : vector<8x64xf32>
    %43 = arith.addf %42, %17 : vector<8x64xf32>
    %cst_36 = arith.constant 0.000000e+00 : f32
    %44 = vector.broadcast %cst_36 : f32 to vector<8x64xf32>
    %45 = arith.maximumf %43, %44 : vector<8x64xf32>
    %c2_i32 = arith.constant 2 : i32
    %46 = arith.index_cast %c2_i32 : i32 to index
    %c0_37 = arith.constant 0 : index
    %c0_38 = arith.constant 0 : index
    %47 = vector.load %arg12[%46, %c0_37, %c0_38] : memref<8x8x64xf32, #tpu.memory_space<vmem>>, vector<1x8x64xf32>
    %48 = vector.shape_cast %47 : vector<1x8x64xf32> to vector<8x64xf32>
    %cst_39 = arith.constant dense<0.000000e+00> : vector<8x64xf32>
    %49 = tpu.matmul %39, %12, %cst_39 {dimension_numbers = #tpu.dot_dimension_numbers<[1], [0], [0], [1], [0, 0, 1, 1], [], []>} : vector<8x64xf32>, vector<64x64xf32>, vector<8x64xf32> -> vector<8x64xf32>
    %50 = arith.addf %48, %49 : vector<8x64xf32>
    %cst_40 = arith.constant 0.000000e+00 : f32
    %51 = vector.broadcast %cst_40 : f32 to vector<8x64xf32>
    %52 = arith.maximumf %50, %51 : vector<8x64xf32>
    %cst_41 = arith.constant dense<0.000000e+00> : vector<8x64xf32>
    %53 = tpu.matmul %52, %13, %cst_41 {dimension_numbers = #tpu.dot_dimension_numbers<[1], [0], [0], [1], [0, 0, 1, 1], [], []>} : vector<8x64xf32>, vector<64x64xf32>, vector<8x64xf32> -> vector<8x64xf32>
    %cst_42 = arith.constant dense<0.000000e+00> : vector<8x64xf32>
    %54 = tpu.matmul %45, %14, %cst_42 {dimension_numbers = #tpu.dot_dimension_numbers<[1], [0], [0], [1], [0, 0, 1, 1], [], []>} : vector<8x64xf32>, vector<64x64xf32>, vector<8x64xf32> -> vector<8x64xf32>
    %55 = arith.addf %53, %54 : vector<8x64xf32>
    %56 = arith.addf %55, %17 : vector<8x64xf32>
    %cst_43 = arith.constant 0.000000e+00 : f32
    %57 = vector.broadcast %cst_43 : f32 to vector<8x64xf32>
    %58 = arith.maximumf %56, %57 : vector<8x64xf32>
    %c3_i32 = arith.constant 3 : i32
    %59 = arith.index_cast %c3_i32 : i32 to index
    %c0_44 = arith.constant 0 : index
    %c0_45 = arith.constant 0 : index
    %60 = vector.load %arg12[%59, %c0_44, %c0_45] : memref<8x8x64xf32, #tpu.memory_space<vmem>>, vector<1x8x64xf32>
    %61 = vector.shape_cast %60 : vector<1x8x64xf32> to vector<8x64xf32>
    %cst_46 = arith.constant dense<0.000000e+00> : vector<8x64xf32>
    %62 = tpu.matmul %52, %12, %cst_46 {dimension_numbers = #tpu.dot_dimension_numbers<[1], [0], [0], [1], [0, 0, 1, 1], [], []>} : vector<8x64xf32>, vector<64x64xf32>, vector<8x64xf32> -> vector<8x64xf32>
    %63 = arith.addf %61, %62 : vector<8x64xf32>
    %cst_47 = arith.constant 0.000000e+00 : f32
    %64 = vector.broadcast %cst_47 : f32 to vector<8x64xf32>
    %65 = arith.maximumf %63, %64 : vector<8x64xf32>
    %cst_48 = arith.constant dense<0.000000e+00> : vector<8x64xf32>
    %66 = tpu.matmul %65, %13, %cst_48 {dimension_numbers = #tpu.dot_dimension_numbers<[1], [0], [0], [1], [0, 0, 1, 1], [], []>} : vector<8x64xf32>, vector<64x64xf32>, vector<8x64xf32> -> vector<8x64xf32>
    %cst_49 = arith.constant dense<0.000000e+00> : vector<8x64xf32>
    %67 = tpu.matmul %58, %14, %cst_49 {dimension_numbers = #tpu.dot_dimension_numbers<[1], [0], [0], [1], [0, 0, 1, 1], [], []>} : vector<8x64xf32>, vector<64x64xf32>, vector<8x64xf32> -> vector<8x64xf32>
    %68 = arith.addf %66, %67 : vector<8x64xf32>
    %69 = arith.addf %68, %17 : vector<8x64xf32>
    %cst_50 = arith.constant 0.000000e+00 : f32
    %70 = vector.broadcast %cst_50 : f32 to vector<8x64xf32>
    %71 = arith.maximumf %69, %70 : vector<8x64xf32>
    %c4_i32 = arith.constant 4 : i32
    %72 = arith.index_cast %c4_i32 : i32 to index
    %c0_51 = arith.constant 0 : index
    %c0_52 = arith.constant 0 : index
    %73 = vector.load %arg12[%72, %c0_51, %c0_52] : memref<8x8x64xf32, #tpu.memory_space<vmem>>, vector<1x8x64xf32>
    %74 = vector.shape_cast %73 : vector<1x8x64xf32> to vector<8x64xf32>
    %cst_53 = arith.constant dense<0.000000e+00> : vector<8x64xf32>
    %75 = tpu.matmul %65, %12, %cst_53 {dimension_numbers = #tpu.dot_dimension_numbers<[1], [0], [0], [1], [0, 0, 1, 1], [], []>} : vector<8x64xf32>, vector<64x64xf32>, vector<8x64xf32> -> vector<8x64xf32>
    %76 = arith.addf %74, %75 : vector<8x64xf32>
    %cst_54 = arith.constant 0.000000e+00 : f32
    %77 = vector.broadcast %cst_54 : f32 to vector<8x64xf32>
    %78 = arith.maximumf %76, %77 : vector<8x64xf32>
    %cst_55 = arith.constant dense<0.000000e+00> : vector<8x64xf32>
    %79 = tpu.matmul %78, %13, %cst_55 {dimension_numbers = #tpu.dot_dimension_numbers<[1], [0], [0], [1], [0, 0, 1, 1], [], []>} : vector<8x64xf32>, vector<64x64xf32>, vector<8x64xf32> -> vector<8x64xf32>
    %cst_56 = arith.constant dense<0.000000e+00> : vector<8x64xf32>
    %80 = tpu.matmul %71, %14, %cst_56 {dimension_numbers = #tpu.dot_dimension_numbers<[1], [0], [0], [1], [0, 0, 1, 1], [], []>} : vector<8x64xf32>, vector<64x64xf32>, vector<8x64xf32> -> vector<8x64xf32>
    %81 = arith.addf %79, %80 : vector<8x64xf32>
    %82 = arith.addf %81, %17 : vector<8x64xf32>
    %cst_57 = arith.constant 0.000000e+00 : f32
    %83 = vector.broadcast %cst_57 : f32 to vector<8x64xf32>
    %84 = arith.maximumf %82, %83 : vector<8x64xf32>
    %c5_i32 = arith.constant 5 : i32
    %85 = arith.index_cast %c5_i32 : i32 to index
    %c0_58 = arith.constant 0 : index
    %c0_59 = arith.constant 0 : index
    %86 = vector.load %arg12[%85, %c0_58, %c0_59] : memref<8x8x64xf32, #tpu.memory_space<vmem>>, vector<1x8x64xf32>
    %87 = vector.shape_cast %86 : vector<1x8x64xf32> to vector<8x64xf32>
    %cst_60 = arith.constant dense<0.000000e+00> : vector<8x64xf32>
    %88 = tpu.matmul %78, %12, %cst_60 {dimension_numbers = #tpu.dot_dimension_numbers<[1], [0], [0], [1], [0, 0, 1, 1], [], []>} : vector<8x64xf32>, vector<64x64xf32>, vector<8x64xf32> -> vector<8x64xf32>
    %89 = arith.addf %87, %88 : vector<8x64xf32>
    %cst_61 = arith.constant 0.000000e+00 : f32
    %90 = vector.broadcast %cst_61 : f32 to vector<8x64xf32>
    %91 = arith.maximumf %89, %90 : vector<8x64xf32>
    %cst_62 = arith.constant dense<0.000000e+00> : vector<8x64xf32>
    %92 = tpu.matmul %91, %13, %cst_62 {dimension_numbers = #tpu.dot_dimension_numbers<[1], [0], [0], [1], [0, 0, 1, 1], [], []>} : vector<8x64xf32>, vector<64x64xf32>, vector<8x64xf32> -> vector<8x64xf32>
    %cst_63 = arith.constant dense<0.000000e+00> : vector<8x64xf32>
    %93 = tpu.matmul %84, %14, %cst_63 {dimension_numbers = #tpu.dot_dimension_numbers<[1], [0], [0], [1], [0, 0, 1, 1], [], []>} : vector<8x64xf32>, vector<64x64xf32>, vector<8x64xf32> -> vector<8x64xf32>
    %94 = arith.addf %92, %93 : vector<8x64xf32>
    %95 = arith.addf %94, %17 : vector<8x64xf32>
    %cst_64 = arith.constant 0.000000e+00 : f32
    %96 = vector.broadcast %cst_64 : f32 to vector<8x64xf32>
    %97 = arith.maximumf %95, %96 : vector<8x64xf32>
    %c6_i32 = arith.constant 6 : i32
    %98 = arith.index_cast %c6_i32 : i32 to index
    %c0_65 = arith.constant 0 : index
    %c0_66 = arith.constant 0 : index
    %99 = vector.load %arg12[%98, %c0_65, %c0_66] : memref<8x8x64xf32, #tpu.memory_space<vmem>>, vector<1x8x64xf32>
    %100 = vector.shape_cast %99 : vector<1x8x64xf32> to vector<8x64xf32>
    %cst_67 = arith.constant dense<0.000000e+00> : vector<8x64xf32>
    %101 = tpu.matmul %91, %12, %cst_67 {dimension_numbers = #tpu.dot_dimension_numbers<[1], [0], [0], [1], [0, 0, 1, 1], [], []>} : vector<8x64xf32>, vector<64x64xf32>, vector<8x64xf32> -> vector<8x64xf32>
    %102 = arith.addf %100, %101 : vector<8x64xf32>
    %cst_68 = arith.constant 0.000000e+00 : f32
    %103 = vector.broadcast %cst_68 : f32 to vector<8x64xf32>
    %104 = arith.maximumf %102, %103 : vector<8x64xf32>
    %cst_69 = arith.constant dense<0.000000e+00> : vector<8x64xf32>
    %105 = tpu.matmul %104, %13, %cst_69 {dimension_numbers = #tpu.dot_dimension_numbers<[1], [0], [0], [1], [0, 0, 1, 1], [], []>} : vector<8x64xf32>, vector<64x64xf32>, vector<8x64xf32> -> vector<8x64xf32>
    %cst_70 = arith.constant dense<0.000000e+00> : vector<8x64xf32>
    %106 = tpu.matmul %97, %14, %cst_70 {dimension_numbers = #tpu.dot_dimension_numbers<[1], [0], [0], [1], [0, 0, 1, 1], [], []>} : vector<8x64xf32>, vector<64x64xf32>, vector<8x64xf32> -> vector<8x64xf32>
    %107 = arith.addf %105, %106 : vector<8x64xf32>
    %108 = arith.addf %107, %17 : vector<8x64xf32>
    %cst_71 = arith.constant 0.000000e+00 : f32
    %109 = vector.broadcast %cst_71 : f32 to vector<8x64xf32>
    %110 = arith.maximumf %108, %109 : vector<8x64xf32>
    %c7_i32 = arith.constant 7 : i32
    %111 = arith.index_cast %c7_i32 : i32 to index
    %c0_72 = arith.constant 0 : index
    %c0_73 = arith.constant 0 : index
    %112 = vector.load %arg12[%111, %c0_72, %c0_73] : memref<8x8x64xf32, #tpu.memory_space<vmem>>, vector<1x8x64xf32>
    %113 = vector.shape_cast %112 : vector<1x8x64xf32> to vector<8x64xf32>
    %cst_74 = arith.constant dense<0.000000e+00> : vector<8x64xf32>
    %114 = tpu.matmul %104, %12, %cst_74 {dimension_numbers = #tpu.dot_dimension_numbers<[1], [0], [0], [1], [0, 0, 1, 1], [], []>} : vector<8x64xf32>, vector<64x64xf32>, vector<8x64xf32> -> vector<8x64xf32>
    %115 = arith.addf %113, %114 : vector<8x64xf32>
    %cst_75 = arith.constant 0.000000e+00 : f32
    %116 = vector.broadcast %cst_75 : f32 to vector<8x64xf32>
    %117 = arith.maximumf %115, %116 : vector<8x64xf32>
    %cst_76 = arith.constant dense<0.000000e+00> : vector<8x64xf32>
    %118 = tpu.matmul %117, %13, %cst_76 {dimension_numbers = #tpu.dot_dimension_numbers<[1], [0], [0], [1], [0, 0, 1, 1], [], []>} : vector<8x64xf32>, vector<64x64xf32>, vector<8x64xf32> -> vector<8x64xf32>
    %cst_77 = arith.constant dense<0.000000e+00> : vector<8x64xf32>
    %119 = tpu.matmul %110, %14, %cst_77 {dimension_numbers = #tpu.dot_dimension_numbers<[1], [0], [0], [1], [0, 0, 1, 1], [], []>} : vector<8x64xf32>, vector<64x64xf32>, vector<8x64xf32> -> vector<8x64xf32>
    %120 = arith.addf %118, %119 : vector<8x64xf32>
    %121 = arith.addf %120, %17 : vector<8x64xf32>
    %cst_78 = arith.constant 0.000000e+00 : f32
    %122 = vector.broadcast %cst_78 : f32 to vector<8x64xf32>
    %123 = arith.maximumf %121, %122 : vector<8x64xf32>
    %c8_i32 = arith.constant 8 : i32
    %c0_79 = arith.constant 0 : index
    %c0_80 = arith.constant 0 : index
    %124 = vector.load %arg13[%c0_79, %c0_80] : memref<8x64xf32, #tpu.memory_space<vmem>>, vector<8x64xf32>
    tpu.vector_store %arg13[%c0_79, %c0_80], %117 {strides = array<i32>} : memref<8x64xf32, #tpu.memory_space<vmem>>, vector<8x64xf32>,
    %c0_81 = arith.constant 0 : index
    %c0_82 = arith.constant 0 : index
    %125 = vector.load %arg14[%c0_81, %c0_82] : memref<8x64xf32, #tpu.memory_space<vmem>>, vector<8x64xf32>
    tpu.vector_store %arg14[%c0_81, %c0_82], %123 {strides = array<i32>} : memref<8x64xf32, #tpu.memory_space<vmem>>, vector<8x64xf32>,
    %c0_i32_83 = arith.constant 0 : i32
    %126 = arith.cmpi eq, %arg1, %c0_i32_83 : i32
    %127 = arith.extui %126 : i1 to i32
    %c0_i32_84 = arith.constant 0 : i32
    %128 = arith.cmpi ne, %127, %c0_i32_84 : i32
    scf.if %128 {
      %c0_85 = arith.constant 0 : index
      %c0_86 = arith.constant 0 : index
      %129 = vector.load %arg14[%c0_85, %c0_86] : memref<8x64xf32, #tpu.memory_space<vmem>>, vector<8x64xf32>
      %c0_87 = arith.constant 0 : index
      %c0_88 = arith.constant 0 : index
      %130 = vector.load %arg9[%c0_87, %c0_88] : memref<1x64xf32, #tpu.memory_space<vmem>>, vector<1x64xf32>
      %131 = vector.broadcast %130 : vector<1x64xf32> to vector<8x64xf32>
      %132 = arith.mulf %129, %131 : vector<8x64xf32>
      %cst_89 = arith.constant dense<0.000000e+00> : vector<8xf32>
      %133 = vector.multi_reduction <add>, %132, %cst_89 [1] : vector<8x64xf32> to vector<8xf32>
      %134 = vector.shape_cast %133 : vector<8xf32> to vector<8x1xf32>
      %c0_90 = arith.constant 0 : index
      %135 = memref.load %arg10[%c0_90] : memref<1xf32, #tpu.memory_space<smem>>
      %136 = vector.broadcast %135 : f32 to vector<8x1xf32>
      %137 = arith.addf %134, %136 : vector<8x1xf32>
      %138 = arith.negf %137 : vector<8x1xf32>
      %139 = math.exp %138 : vector<8x1xf32>
      %cst_91 = arith.constant 1.000000e+00 : f32
      %140 = vector.broadcast %cst_91 : f32 to vector<8x1xf32>
      %141 = arith.addf %140, %139 : vector<8x1xf32>
      %142 = arith.divf %140, %141 : vector<8x1xf32>
      %c0_92 = arith.constant 0 : index
      %c0_93 = arith.constant 0 : index
      %143 = vector.load %arg11[%c0_92, %c0_93] : memref<8x1xf32, #tpu.memory_space<vmem>>, vector<8x1xf32>
      tpu.vector_store %arg11[%c0_92, %c0_93], %142 {strides = array<i32>} : memref<8x1xf32, #tpu.memory_space<vmem>>, vector<8x1xf32>,
    } else {
    }
    return
  }
  func.func @transform_0(%arg0: i32, %arg1: i32) -> (i32, i32, i32) {
    %c0_i32 = arith.constant 0 : i32
    %c0_i32_0 = arith.constant 0 : i32
    return %arg1, %arg0, %c0_i32 : i32, i32, i32
  }
  func.func @transform_1(%arg0: i32, %arg1: i32) -> (i32, i32) {
    %c0_i32 = arith.constant 0 : i32
    %c0_i32_0 = arith.constant 0 : i32
    %c0_i32_1 = arith.constant 0 : i32
    return %c0_i32, %c0_i32_0 : i32, i32
  }
  func.func @transform_2(%arg0: i32, %arg1: i32) -> (i32, i32) {
    %c0_i32 = arith.constant 0 : i32
    %c0_i32_0 = arith.constant 0 : i32
    %c0_i32_1 = arith.constant 0 : i32
    return %c0_i32, %c0_i32_0 : i32, i32
  }
  func.func @transform_3(%arg0: i32, %arg1: i32) -> (i32, i32) {
    %c0_i32 = arith.constant 0 : i32
    %c0_i32_0 = arith.constant 0 : i32
    %c0_i32_1 = arith.constant 0 : i32
    return %c0_i32, %c0_i32_0 : i32, i32
  }
  func.func @transform_4(%arg0: i32, %arg1: i32) -> (i32, i32) {
    %c0_i32 = arith.constant 0 : i32
    %c0_i32_0 = arith.constant 0 : i32
    %c0_i32_1 = arith.constant 0 : i32
    return %c0_i32, %c0_i32_0 : i32, i32
  }
  func.func @transform_5(%arg0: i32, %arg1: i32) -> (i32, i32) {
    %c0_i32 = arith.constant 0 : i32
    %c0_i32_0 = arith.constant 0 : i32
    %c0_i32_1 = arith.constant 0 : i32
    return %c0_i32, %c0_i32_0 : i32, i32
  }
  func.func @transform_6(%arg0: i32, %arg1: i32) -> (i32, i32) {
    %c0_i32 = arith.constant 0 : i32
    %c0_i32_0 = arith.constant 0 : i32
    %c0_i32_1 = arith.constant 0 : i32
    return %c0_i32, %c0_i32_0 : i32, i32
  }
  func.func @transform_7(%arg0: i32, %arg1: i32) -> (i32, i32) {
    %c0_i32 = arith.constant 0 : i32
    %c0_i32_0 = arith.constant 0 : i32
    %c0_i32_1 = arith.constant 0 : i32
    return %c0_i32, %c0_i32_0 : i32, i32
  }
  func.func @transform_8(%arg0: i32, %arg1: i32) -> i32 {
    %c0_i32 = arith.constant 0 : i32
    %c0_i32_0 = arith.constant 0 : i32
    return %c0_i32 : i32
  }
  func.func @transform_9(%arg0: i32, %arg1: i32) -> (i32, i32) {
    %c0_i32 = arith.constant 0 : i32
    %c0_i32_0 = arith.constant 0 : i32
    return %arg0, %c0_i32 : i32, i32
  }
}

</mosaic_0001>

<bundles_post_ra>
// kernel: tpu_custom_call.1
= control target key start
LH: loop header
LB: loop body
LE: loop exit
PB: predicated region body
PF: predicated region fallthrough
CT: control target
= control target key end

     0   :  { %15 = vsyncpa [#allocation7], 0  ;;  %s3751_s0 = inlined_call_operand.hbm [shape: f32[8,8,16], index: 0, kind: input, shape index: {}]   ;;  %s3752_s1 = inlined_call_operand.hbm [shape: f32[16,64], index: 1, kind: input, shape index: {}]   ;;  %s3753_s2 = inlined_call_operand.hbm [shape: f32[64,64], index: 2, kind: input, shape index: {}]   ;;  %s3754_s3 = inlined_call_operand.vmem [shape: f32[1,64], index: 3, kind: input, shape index: {}]   ;;  %s3755_s4 = inlined_call_operand.hbm [shape: f32[64,64], index: 4, kind: input, shape index: {}]   ;;  %s3756_s5 = inlined_call_operand.hbm [shape: f32[64,64], index: 5, kind: input, shape index: {}]   ;;  %s3757_s6 = inlined_call_operand.vmem [shape: f32[1,64], index: 6, kind: input, shape index: {}]   ;;  %s3758_s7 = inlined_call_operand.vmem [shape: f32[1,64], index: 7, kind: input, shape index: {}]   ;;  %s3759_s8 = inlined_call_operand.<no memory space> [shape: f32[1], index: 8, kind: input, shape index: {}]   ;;  %s3760_s9 = inlined_call_operand.vmem [shape: f32[8,1], index: 9, kind: output, shape index: {}]  }
   0x1   :  { %16 = vsyncpa [#allocation9], 0 }
   0x2   :  { %17 = vsyncpa [#allocation12], 0  ;;  %s3266_s30 = smov [#allocation8]   ;;  %s3267_s11 = smov [#allocation11]  }
   0x3   :  { %s35_s10 = sshll.u32 %s3266_s30, 4  ;;  %s61_s12 = sshll.u32 %s3267_s11, 4  ;;  %s36_s10 = int_to_ptr.vmem [resolvable:$true] %s35_s10  ;;  %s3326_s12 = int_to_ptr.vmem [resolvable:$true] %s61_s12 }
   0x4   :  { %s3150_s15 = scalar_lea.hbm %s3752_s1, 256 }
   0x5   :  { %p3151_p0 = scmp.ne.s32.totalorder %s3752_s1, %s3150_s15  ;;  %p3154_p1 = scmp.lt.u32.totalorder %s3150_s15, %s3752_s1 }
   0x7   :  { %p3156_p2 = pnand %p3154_p1, %p3151_p0 }
   0x9   :  { %3159 = shalt.err (!%p3156_p2)
}
   0xa   :  { %s3160_s20 = scalar_lea.vmem %s36_s10, 256  ;;  %p3165_p4 = scmp.lt.s32.totalorder %s36_s10, %s36_s10 }
   0xb   :  { %p3161_p3 = scmp.ne.s32.totalorder %s36_s10, %s3160_s20  ;;  %p3166_p5 = scmp.lt.s32.totalorder %s3160_s20, %s3160_s20 }
   0xd   :  { %p3167_p6 = por %p3166_p5, %p3165_p4 }
   0xf   :  { %p3168_p7 = pnand %p3167_p6, %p3161_p3 }
  0x11   :  { %3171 = shalt.err (!%p3168_p7)
}
  0x12   :  { %s3268_s21 = smov 128   ;;  %s3269_s22 = smov 8  }
  0x13   :  { %41 = dma.hbm_to_vmem [thread:$0]  %s3752_s1, 256, %s36_s10, [#allocation9], %s3268_s21, %s3268_s21, %s3269_s22  }
  0x14   :  { %s3172_s27 = scalar_lea.hbm %s3755_s4, 1024 }
  0x15   :  { %p3173_p8 = scmp.ne.s32.totalorder %s3755_s4, %s3172_s27  ;;  %p3176_p9 = scmp.lt.u32.totalorder %s3172_s27, %s3755_s4 }
  0x17   :  { %p3178_p10 = pnand %p3176_p9, %p3173_p8 }
  0x19   :  { %3181 = shalt.err (!%p3178_p10)
}
  0x1a   :  { %s3182_s13 = scalar_lea.vmem %s3326_s12, 1024  ;;  %p3187_p12 = scmp.lt.s32.totalorder %s3326_s12, %s3326_s12 }
  0x1b   :  { %p3183_p11 = scmp.ne.s32.totalorder %s3326_s12, %s3182_s13  ;;  %p3188_p13 = scmp.lt.s32.totalorder %s3182_s13, %s3182_s13 }
  0x1d   :  { %p3189_p0 = por %p3188_p13, %p3187_p12 }
  0x1f   :  { %p3190_p1 = pnand %p3189_p0, %p3183_p11 }
  0x21   :  { %3193 = shalt.err (!%p3190_p1)
}
  0x22   :  { %67 = dma.hbm_to_vmem [thread:$0]  %s3755_s4, 1024, %s3326_s12, [#allocation12], %s3268_s21, %s3268_s21, %s3269_s22  }
  0x23   :  { %s3270_s14 = smov [#allocation6]   ;;  %s3271_s16 = smov [#allocation10]  }
  0x24   :  { %s23_s15 = sshll.u32 %s3270_s14, 4  ;;  %s47_s17 = sshll.u32 %s3271_s16, 4  ;;  %s24_s15 = int_to_ptr.vmem [resolvable:$true] %s23_s15  ;;  %s3363_s17 = int_to_ptr.vmem [resolvable:$true] %s47_s17 }
  0x25   :  { %s3194_s20 = scalar_lea.hbm %s3751_s0, 1024 }
  0x26   :  { %p3195_p2 = scmp.ne.s32.totalorder %s3751_s0, %s3194_s20  ;;  %p3198_p3 = scmp.lt.u32.totalorder %s3194_s20, %s3751_s0 }
  0x28   :  { %p3200_p4 = pnand %p3198_p3, %p3195_p2 }
  0x2a   :  { %3203 = shalt.err (!%p3200_p4)
}
  0x2b   :  { %s3204_s4 = scalar_lea.vmem %s24_s15, 1024  ;;  %p3209_p6 = scmp.lt.s32.totalorder %s24_s15, %s24_s15 }
  0x2c   :  { %p3205_p5 = scmp.ne.s32.totalorder %s24_s15, %s3204_s4  ;;  %p3210_p7 = scmp.lt.s32.totalorder %s3204_s4, %s3204_s4 }
  0x2e   :  { %p3211_p8 = por %p3210_p7, %p3209_p6 }
  0x30   :  { %p3212_p9 = pnand %p3211_p8, %p3205_p5 }
  0x32   :  { %3215 = shalt.err (!%p3212_p9)
}
  0x33   :  { %29 = dma.hbm_to_vmem [thread:$0]  %s3751_s0, 1024, %s24_s15, [#allocation7], %s3268_s21, %s3268_s21, %s3269_s22  }
  0x34   :  { %s3216_s30 = scalar_lea.hbm %s3753_s2, 1024 }
  0x35   :  { %p3217_p10 = scmp.ne.s32.totalorder %s3753_s2, %s3216_s30  ;;  %p3220_p11 = scmp.lt.u32.totalorder %s3216_s30, %s3753_s2 }
  0x37   :  { %p3222_p12 = pnand %p3220_p11, %p3217_p10 }
  0x39   :  { %3225 = shalt.err (!%p3222_p12)
}
  0x3a   :  { %s3226_s14 = scalar_lea.vmem %s3363_s17, 1024  ;;  %p3231_p0 = scmp.lt.s32.totalorder %s3363_s17, %s3363_s17 }
  0x3b   :  { %p3227_p13 = scmp.ne.s32.totalorder %s3363_s17, %s3226_s14  ;;  %p3232_p1 = scmp.lt.s32.totalorder %s3226_s14, %s3226_s14 }
  0x3d   :  { %p3233_p2 = por %p3232_p1, %p3231_p0 }
  0x3f   :  { %p3234_p3 = pnand %p3233_p2, %p3227_p13 }
  0x41   :  { %3237 = shalt.err (!%p3234_p3)
}
  0x42   :  { %53 = dma.hbm_to_vmem [thread:$0]  %s3753_s2, 1024, %s3363_s17, [#allocation9], %s3268_s21, %s3268_s21, %s3269_s22  }
  0x43   :  { %s3272_s16 = smov [#allocation13]   ;;  %s3238_s23 = scalar_lea.hbm %s3756_s5, 1024 }
  0x44   :  { %s73_s18 = sshll.u32 %s3272_s16, 4  ;;  %p3239_p4 = scmp.ne.s32.totalorder %s3756_s5, %s3238_s23  ;;  %s74_s18 = int_to_ptr.vmem [resolvable:$true] %s73_s18 }
  0x45   :  { %p3242_p5 = scmp.lt.u32.totalorder %s3238_s23, %s3756_s5 }
  0x47   :  { %p3244_p6 = pnand %p3242_p5, %p3239_p4 }
  0x49   :  { %3247 = shalt.err (!%p3244_p6)
}
  0x4a   :  { %s3248_s12 = scalar_lea.vmem %s74_s18, 1024  ;;  %p3253_p8 = scmp.lt.s32.totalorder %s74_s18, %s74_s18 }
  0x4b   :  { %p3249_p7 = scmp.ne.s32.totalorder %s74_s18, %s3248_s12  ;;  %p3254_p9 = scmp.lt.s32.totalorder %s3248_s12, %s3248_s12 }
  0x4d   :  { %p3255_p10 = por %p3254_p9, %p3253_p8 }
  0x4f   :  { %p3256_p11 = pnand %p3255_p10, %p3249_p7 }
  0x51   :  { %3259 = shalt.err (!%p3256_p11)
}
  0x52   :  { %79 = dma.hbm_to_vmem [thread:$0]  %s3756_s5, 1024, %s74_s18, [#allocation12], %s3268_s21, %s3268_s21, %s3269_s22  }
  0x53   :  { %3260 = dma.done.wait [#allocation7], 1024  }
  0x54   :  { %3261 = vsyncadd [#allocation7], 4294966272 }
  0x55   :  { %3262 = dma.done.wait [#allocation9], 1280  }
  0x56   :  { %3263 = vsyncadd [#allocation9], 4294966016 }
  0x57   :  { %3264 = dma.done.wait [#allocation12], 2048  }
  0x58   :  { %3265 = vsyncadd [#allocation12], 4294965248  ;;  %v3273_v0 = vmov 0.0|0.0   ;;  %vm3274_vm0 = vmmov 0   ;;  %v3275_v1 = vmov 0.0   ;;  %vm105_vm1 = vcmask 523264  }
  0x59   :  { %2848 = vmatprep.subr.bf16.mxu1 %v3273_v0  ;;  %2404 = vmatprep.mubr.msk.f32.mxu1 %vm3274_vm0, %v3275_v1  ;;  %106 = vst.msk [vmem:[#allocation3] sm:$0xff] %vm105_vm1, %v3275_v1  ;;  %107 = vst.msk [vmem:[#allocation4] sm:$0xff] %vm105_vm1, %v3275_v1  ;;  %vm125_vm2 = vcmask 130048   ;;  %v116_v2 = vld [vmem:[#allocation8] sm:$0xff]  ;;  %v117_v3 = vld [vmem:[#allocation8 + $0x8] sm:$0xff]  ;;  %vm2101_vm3 = vcmask 7168  }
  0x5a   :  { %v264_v4 = vld [vmem:[#allocation10] sm:$0xff]  ;;  %v2844_v5 = vpack.c.bf16 %v117_v3, %v116_v2  ;;  %v265_v6 = vld [vmem:[#allocation10 + $0x8] sm:$0xff]  ;;  %v108_v7 = vld [vmem:[#allocation6] sm:$0xff] }
  0x5b   :  { %v3422_v8 = vpack.c.bf16 %v265_v6, %v264_v4  ;;  %2376 = vmatprep.mubr.msk.f32.mxu0 %vm125_vm2, %v108_v7  ;;  %v266_v9 = vld [vmem:[#allocation10 + $0x10] sm:$0xff]  ;;  %v267_v10 = vld [vmem:[#allocation10 + $0x18] sm:$0xff]  ;;  %v280_v13 = vld [vmem:[#allocation13] sm:$0xff] }
  0x5c   :  { %2845 = vmatprep.subr.bf16.mxu0 %v2844_v5  ;;  %v109_v11 = vld [vmem:[#allocation6 + $0x8] sm:$0xff]  ;;  %v3426_v12 = vpack.c.bf16 %v267_v10, %v266_v9  ;;  %v281_v14 = vld [vmem:[#allocation13 + $0x8] sm:$0xff]  ;;  %v268_v15 = vld [vmem:[#allocation10 + $0x20] sm:$0xff] }
  0x5d   :  { %2850 = vmatpush3.bf16.msra.mxu1 %v3422_v8  ;;  %2847 = vmatpush3.bf16.msra.mxu0 %v2844_v5  ;;  %v269_v16 = vld [vmem:[#allocation10 + $0x28] sm:$0xff]  ;;  %v3430_v17 = vpack.c.bf16 %v281_v14, %v280_v13  ;;  %v282_v18 = vld [vmem:[#allocation13 + $0x10] sm:$0xff]  ;;  %v110_v19 = vld [vmem:[#allocation6 + $0x10] sm:$0xff] }
  0x5e   :  { %2851 = vmatprep.subr.bf16.mxu1 %v3273_v0  ;;  %2860 = vmatprep.subr.bf16.mxu0 %v3273_v0  ;;  %v283_v20 = vld [vmem:[#allocation13 + $0x18] sm:$0xff]  ;;  %v3434_v21 = vpack.c.bf16 %v269_v16, %v268_v15  ;;  %v270_v22 = vld [vmem:[#allocation10 + $0x30] sm:$0xff]  ;;  %v111_v23 = vld [vmem:[#allocation6 + $0x18] sm:$0xff] }
  0x5f   :  { %v3437_v24 = vpack.c.bf16 %v283_v20, %v282_v18  ;;  %v271_v25 = vld [vmem:[#allocation10 + $0x38] sm:$0xff]  ;;  %v284_v26 = vld [vmem:[#allocation13 + $0x20] sm:$0xff]  ;;  %v285_v27 = vld [vmem:[#allocation13 + $0x28] sm:$0xff] }
  0x60   :  { %2377 = vmatmul.mubr.msk.f32.vlgmr.msra.gmra.mrb[0].mxu0 %vm125_vm2, %v109_v11  ;;  %v112_v28 = vld [vmem:[#allocation6 + $0x20] sm:$0xff]  ;;  %v3444_v29 = vpack.c.bf16 %v271_v25, %v270_v22  ;;  %v113_v30 = vld [vmem:[#allocation6 + $0x28] sm:$0xff]  ;;  %v3447_v31 = vpack.c.bf16 %v285_v27, %v284_v26  ;;  %v114_v34 = vld [vmem:[#allocation6 + $0x30] sm:$0xff] }
  0x61   :  { %2853 = vmatpush3.bf16.msra.mxu1 %v3426_v12  ;;  %2862 = vmatpush3.bf16.msra.mxu0 %v3430_v17  ;;  %v286_v32 = vld [vmem:[#allocation13 + $0x30] sm:$0xff]  ;;  %v287_v33 = vld [vmem:[#allocation13 + $0x38] sm:$0xff]  ;;  %v295_v35 = vld [vmem:[#allocation3] sm:$0xff] }
  0x62   :  { %2854 = vmatprep.subr.bf16.mxu1 %v3273_v0  ;;  %2379 = vmatprep.mubr.msk.f32.mxu0 %vm125_vm2, %v110_v19  ;;  %v115_v36 = vld [vmem:[#allocation6 + $0x38] sm:$0xff]  ;;  %v3455_v37 = vpack.c.bf16 %v287_v33, %v286_v32  ;;  %v272_v38 = vld [vmem:[#allocation11] sm:$0xff]  ;;  %v274_v42 = vld [vmem:[#allocation11 + $0x10] sm:$0xff] }
  0x63   :  { %2863 = vmatprep.subr.bf16.mxu0 %v3273_v0  ;;  %v273_v39 = vld [vmem:[#allocation11 + $0x8] sm:$0xff]  ;;  %v275_v43 = vld [vmem:[#allocation11 + $0x18] sm:$0xff]  ;;  %v276_v45 = vld [vmem:[#allocation11 + $0x20] sm:$0xff] }
  0x64   :  { %2380 = vmatmul.mubr.msk.f32.gmra.mrb[2].mxu0 %vm125_vm2, %v111_v23  ;;  %v3468_v40 = vpack.c.bf16 %v273_v39, %v272_v38  ;;  %v296_v41 = vld [vmem:[#allocation4] sm:$0xff]  ;;  %v3475_v44 = vpack.c.bf16 %v275_v43, %v274_v42  ;;  %v278_v48 = vld [vmem:[#allocation11 + $0x30] sm:$0xff]  ;;  %v279_v49 = vld [vmem:[#allocation11 + $0x38] sm:$0xff] }
  0x65   :  { %2856 = vmatpush3.bf16.msra.mxu1 %v3434_v21  ;;  %2865 = vmatpush3.bf16.msra.mxu0 %v3437_v24  ;;  %v277_v46 = vld [vmem:[#allocation11 + $0x28] sm:$0xff]  ;;  %v3489_v50 = vpack.c.bf16 %v279_v49, %v278_v48  ;;  %v2110_v51 = vld [vmem:[%s3754_s3] ss:$0 sm:$0xff] }
  0x66   :  { %2857 = vmatprep.subr.bf16.mxu1 %v3273_v0  ;;  %2382 = vmatprep.mubr.msk.f32.mxu0 %vm125_vm2, %v112_v28  ;;  %v3480_v47 = vpack.c.bf16 %v277_v46, %v276_v45  ;;  %v3531_v15 = vld [vmem:[%s3757_s6] ss:$0 sm:$0xff] }
  0x67   :  { %2866 = vmatprep.subr.bf16.mxu0 %v3273_v0 }
  0x68   :  { %2383 = vmatmul.mubr.msk.f32.gmra.mrb[4].mxu0 %vm125_vm2, %v113_v30 }
  0x69   :  { %2859 = vmatpush3.bf16.msra.mxu1 %v3444_v29  ;;  %2868 = vmatpush3.bf16.msra.mxu0 %v3447_v31 }
  0x6a   :  { %2385 = vmatprep.mubr.msk.f32.mxu0 %vm125_vm2, %v114_v34  ;;  %2869 = vmatprep.subr.bf16.mxu0 %v3273_v0 }
  0x6b   :  { %2872 = vmatprep.subr.bf16.mxu1 %v3273_v0 }
  0x6c   :  { %2405 = vmatmul.mubr.msk.f32.vlgmr.msra.gmra.mrb[0].mxu1 %vm105_vm1, %v295_v35  ;;  %2386 = vmatmul.mubr.msk.f32.gmra.mrb[6].mxu0 %vm125_vm2, %v115_v36 }
  0x6d   :  { %2871 = vmatpush3.bf16.msra.mxu0 %v3455_v37  ;;  %2423 = vmatprep.mubr.msk.f32.mxu0 %vm3274_vm0, %v3275_v1 }
  0x6e   :  { %2884 = vmatprep.subr.bf16.mxu0 %v3273_v0  ;;  %2442 = vmatprep.mubr.msk.f32.mxu1 %vm3274_vm0, %v3275_v1 }
  0x6f   :  { %2874 = vmatpush3.bf16.msra.mxu1 %v3468_v40 }
  0x70   :  { %2424 = vmatmul.mubr.msk.f32.vlgmr.msra.gmra.mrb[8].mxu0 %vm105_vm1, %v296_v41  ;;  %2875 = vmatprep.subr.bf16.mxu1 %v3273_v0 }
  0x71   :  { %2886 = vmatpush3.bf16.msra.mxu0 %v3422_v8  ;;  %2461 = vmatprep.mubr.msk.f32.mxu0 %vm3274_vm0, %v3275_v1 }
  0x72   :  { %2887 = vmatprep.subr.bf16.mxu0 %v3273_v0 }
  0x73   :  { %2877 = vmatpush3.bf16.msra.mxu1 %v3475_v44 }
  0x74   :  { %2878 = vmatprep.subr.bf16.mxu1 %v3273_v0 }
  0x75   :  { %2889 = vmatpush3.bf16.msra.mxu0 %v3426_v12 }
  0x76   :  { %2890 = vmatprep.subr.bf16.mxu0 %v3273_v0 }
  0x77   :  { %2880 = vmatpush3.bf16.msra.mxu1 %v3480_v47 }
  0x78   :  { %2881 = vmatprep.subr.bf16.mxu1 %v3273_v0 }
  0x79   :  { %2892 = vmatpush3.bf16.msra.mxu0 %v3434_v21 }
  0x7a   :  { %2893 = vmatprep.subr.bf16.mxu0 %v3273_v0 }
  0x7b   :  { %2883 = vmatpush3.bf16.msra.mxu1 %v3489_v50 }
  0x7c   :  { %2896 = vmatprep.subr.bf16.mxu1 %v3273_v0 }
  0x7d   :  { %2895 = vmatpush3.bf16.msra.mxu0 %v3444_v29 }
  0x7e   :  { %2908 = vmatprep.subr.bf16.mxu0 %v3273_v0 }
 0x133   :  { %v2378_v52 = vpop.f32.mrb[0].mxu0 }
 0x134   :  { %v222_v53 = vadd.f32 %v2378_v52, %v2110_v51  ;;  %v216_v54 = vpop.f32.mrb[1].mxu0 }
 0x135   :  { %v217_v55 = vadd.f32 %v2110_v51, %v216_v54 }
 0x136   :  { %257 = vst.msk [vmem:[#allocation2 + $0x8] sm:$0xff] %vm105_vm1, %v222_v53 }
 0x137   :  { %256 = vst.msk [vmem:[#allocation2] sm:$0xff] %vm105_vm1, %v217_v55  ;;  %v2381_v56 = vpop.f32.mrb[2].mxu0 }
 0x138   :  { %v232_v57 = vadd.f32 %v2381_v56, %v2110_v51  ;;  %v226_v58 = vpop.f32.mrb[3].mxu0 }
 0x139   :  { %v227_v59 = vadd.f32 %v2110_v51, %v226_v58 }
 0x13a   :  { %259 = vst.msk [vmem:[#allocation2 + $0x18] sm:$0xff] %vm105_vm1, %v232_v57 }
 0x13b   :  { %258 = vst.msk [vmem:[#allocation2 + $0x10] sm:$0xff] %vm105_vm1, %v227_v59  ;;  %v2384_v60 = vpop.f32.mrb[4].mxu0 }
 0x13c   :  { %v242_v61 = vadd.f32 %v2384_v60, %v2110_v51  ;;  %v236_v62 = vpop.f32.mrb[5].mxu0 }
 0x13d   :  { %v237_v63 = vadd.f32 %v2110_v51, %v236_v62  ;;  %v522_v18 = vld [vmem:[#allocation2 + $0x8] sm:$0xff] }
 0x13e   :  { %v297_v2 = vld [vmem:[#allocation2] sm:$0xff]  ;;  %261 = vst.msk [vmem:[#allocation2 + $0x28] sm:$0xff] %vm105_vm1, %v242_v61 }
 0x13f   :  { %v367_v3 = vpop.f32.mrb[0].mxu1  ;;  %260 = vst.msk [vmem:[#allocation2 + $0x20] sm:$0xff] %vm105_vm1, %v237_v63  ;;  %v2387_v4 = vpop.f32.mrb[6].mxu0 }
 0x140   :  { %v371_v5 = vadd.f32 %v367_v3, %v297_v2  ;;  %v2406_v6 = vpop.f32.mrb[1].mxu1  ;;  %v252_v7 = vadd.f32 %v2387_v4, %v2110_v51  ;;  %v246_v9 = vpop.f32.mrb[7].mxu0 }
 0x141   :  { %v247_v10 = vadd.f32 %v2110_v51, %v246_v9  ;;  %v966_v53 = vld [vmem:[#allocation2 + $0x18] sm:$0xff] }
 0x142   :  { %v372_v11 = vmax.f32 %v371_v5, 0.0  ;;  %263 = vst.msk [vmem:[#allocation2 + $0x38] sm:$0xff] %vm105_vm1, %v252_v7  ;;  %v744_v39 = vld [vmem:[#allocation2 + $0x10] sm:$0xff] }
 0x143   :  { %262 = vst.msk [vmem:[#allocation2 + $0x30] sm:$0xff] %vm105_vm1, %v247_v10  ;;  %v442_v13 = vpop.f32.mrb[8].mxu0 }
 0x144   :  { %2443 = vmatmul.mubr.msk.f32.vlgmr.msra.gmra.mrb[2].mxu1 %vm105_vm1, %v372_v11  ;;  %2462 = vmatmul.mubr.msk.f32.vlgmr.msra.gmra.mrb[10].mxu0 %vm105_vm1, %v372_v11  ;;  %v2425_v14 = vpop.f32.mrb[9].mxu0 }
 0x145   :  { %2910 = vmatpush3.bf16.msra.mxu0 %v3468_v40  ;;  %2898 = vmatpush3.bf16.msra.mxu1 %v3430_v17 }
 0x146   :  { %2911 = vmatprep.subr.bf16.mxu0 %v3273_v0  ;;  %2899 = vmatprep.subr.bf16.mxu1 %v3273_v0  ;;  %v1188_v5 = vld [vmem:[#allocation2 + $0x20] sm:$0xff] }
 0x147   :  { %2499 = vmatprep.mubr.msk.f32.mxu0 %vm3274_vm0, %v3275_v1  ;;  %2480 = vmatprep.mubr.msk.f32.mxu1 %vm3274_vm0, %v3275_v1 }
 0x149   :  { %2913 = vmatpush3.bf16.msra.mxu0 %v3475_v44  ;;  %2901 = vmatpush3.bf16.msra.mxu1 %v3437_v24 }
 0x14a   :  { %2914 = vmatprep.subr.bf16.mxu0 %v3273_v0  ;;  %2902 = vmatprep.subr.bf16.mxu1 %v3273_v0 }
 0x14d   :  { %2916 = vmatpush3.bf16.msra.mxu0 %v3480_v47  ;;  %2904 = vmatpush3.bf16.msra.mxu1 %v3447_v31 }
 0x14e   :  { %2917 = vmatprep.subr.bf16.mxu0 %v3273_v0  ;;  %2905 = vmatprep.subr.bf16.mxu1 %v3273_v0 }
 0x151   :  { %2919 = vmatpush3.bf16.msra.mxu0 %v3489_v50  ;;  %2907 = vmatpush3.bf16.msra.mxu1 %v3455_v37 }
 0x152   :  { %2920 = vmatprep.subr.bf16.mxu1 %v3273_v0  ;;  %2932 = vmatprep.subr.bf16.mxu0 %v3273_v0 }
 0x217   :  { %v515_v16 = vpop.f32.mrb[2].mxu1  ;;  %v589_v19 = vpop.f32.mrb[10].mxu0 }
 0x218   :  { %v516_v20 = vadd.f32 %v515_v16, %v442_v13  ;;  %v593_v22 = vadd.f32 %v589_v19, %v522_v18  ;;  %v2444_v23 = vpop.f32.mrb[3].mxu1  ;;  %v2463_v25 = vpop.f32.mrb[11].mxu0  ;;  %v1410_v19 = vld [vmem:[#allocation2 + $0x28] sm:$0xff] }
 0x21a   :  { %v519_v26 = vadd.f32 %v3531_v15, %v516_v20  ;;  %v594_v27 = vmax.f32 %v593_v22, 0.0 }
 0x21c   :  { %v520_v28 = vmax.f32 %v519_v26, 0.0  ;;  %2500 = vmatmul.mubr.msk.f32.vlgmr.msra.gmra.mrb[12].mxu0 %vm105_vm1, %v594_v27 }
 0x21d   :  { %2934 = vmatpush3.bf16.msra.mxu0 %v3430_v17  ;;  %2537 = vmatprep.mubr.msk.f32.mxu0 %vm3274_vm0, %v3275_v1 }
 0x21e   :  { %2481 = vmatmul.mubr.msk.f32.vlgmr.msra.gmra.mrb[4].mxu1 %vm105_vm1, %v520_v28  ;;  %2935 = vmatprep.subr.bf16.mxu0 %v3273_v0 }
 0x21f   :  { %2922 = vmatpush3.bf16.msra.mxu1 %v3422_v8  ;;  %2518 = vmatprep.mubr.msk.f32.mxu1 %vm3274_vm0, %v3275_v1 }
 0x220   :  { %2923 = vmatprep.subr.bf16.mxu1 %v3273_v0 }
 0x221   :  { %2937 = vmatpush3.bf16.msra.mxu0 %v3437_v24 }
 0x222   :  { %2938 = vmatprep.subr.bf16.mxu0 %v3273_v0 }
 0x223   :  { %2925 = vmatpush3.bf16.msra.mxu1 %v3426_v12 }
 0x224   :  { %2926 = vmatprep.subr.bf16.mxu1 %v3273_v0 }
 0x225   :  { %2940 = vmatpush3.bf16.msra.mxu0 %v3447_v31 }
 0x226   :  { %2941 = vmatprep.subr.bf16.mxu0 %v3273_v0 }
 0x227   :  { %2928 = vmatpush3.bf16.msra.mxu1 %v3434_v21 }
 0x228   :  { %2929 = vmatprep.subr.bf16.mxu1 %v3273_v0 }
 0x229   :  { %2943 = vmatpush3.bf16.msra.mxu0 %v3455_v37 }
 0x22a   :  { %2956 = vmatprep.subr.bf16.mxu0 %v3273_v0 }
 0x22b   :  { %2931 = vmatpush3.bf16.msra.mxu1 %v3444_v29 }
 0x22c   :  { %2944 = vmatprep.subr.bf16.mxu1 %v3273_v0 }
 0x22e   :  { %2519 = vmatmul.mubr.msk.f32.vlgmr.msra.gmra.mrb[6].mxu1 %vm105_vm1, %v594_v27 }
 0x22f   :  { %2946 = vmatpush3.bf16.msra.mxu1 %v3468_v40  ;;  %2556 = vmatprep.mubr.msk.f32.mxu1 %vm3274_vm0, %v3275_v1 }
 0x230   :  { %2947 = vmatprep.subr.bf16.mxu1 %v3273_v0 }
 0x233   :  { %2949 = vmatpush3.bf16.msra.mxu1 %v3475_v44 }
 0x234   :  { %2950 = vmatprep.subr.bf16.mxu1 %v3273_v0 }
 0x237   :  { %2952 = vmatpush3.bf16.msra.mxu1 %v3480_v47 }
 0x238   :  { %2953 = vmatprep.subr.bf16.mxu1 %v3273_v0 }
 0x23b   :  { %2955 = vmatpush3.bf16.msra.mxu1 %v3489_v50 }
 0x23c   :  { %2968 = vmatprep.subr.bf16.mxu1 %v3273_v0 }
 0x2ef   :  { %v737_v30 = vpop.f32.mrb[12].mxu0 }
 0x2f0   :  { %v2501_v32 = vpop.f32.mrb[13].mxu0 }
 0x2f1   :  { %v664_v33 = vpop.f32.mrb[4].mxu1 }
 0x2f2   :  { %v738_v34 = vadd.f32 %v737_v30, %v664_v33  ;;  %v2482_v35 = vpop.f32.mrb[5].mxu1 }
 0x2f4   :  { %v741_v36 = vadd.f32 %v3531_v15, %v738_v34 }
 0x2f6   :  { %v742_v38 = vmax.f32 %v741_v36, 0.0 }
 0x2f8   :  { %2538 = vmatmul.mubr.msk.f32.vlgmr.msra.gmra.mrb[14].mxu0 %vm105_vm1, %v742_v38  ;;  %v1632_v38 = vld [vmem:[#allocation2 + $0x30] sm:$0xff] }
 0x2f9   :  { %2958 = vmatpush3.bf16.msra.mxu0 %v3422_v8  ;;  %2575 = vmatprep.mubr.msk.f32.mxu0 %vm3274_vm0, %v3275_v1 }
 0x2fa   :  { %2959 = vmatprep.subr.bf16.mxu0 %v3273_v0 }
 0x2fd   :  { %2961 = vmatpush3.bf16.msra.mxu0 %v3426_v12 }
 0x2fe   :  { %2962 = vmatprep.subr.bf16.mxu0 %v3273_v0 }
 0x301   :  { %v811_v41 = vpop.f32.mrb[6].mxu1  ;;  %2964 = vmatpush3.bf16.msra.mxu0 %v3434_v21 }
 0x302   :  { %v815_v42 = vadd.f32 %v811_v41, %v744_v39  ;;  %v2520_v43 = vpop.f32.mrb[7].mxu1  ;;  %2965 = vmatprep.subr.bf16.mxu0 %v3273_v0 }
 0x304   :  { %v816_v45 = vmax.f32 %v815_v42, 0.0 }
 0x305   :  { %2967 = vmatpush3.bf16.msra.mxu0 %v3444_v29 }
 0x306   :  { %2557 = vmatmul.mubr.msk.f32.vlgmr.msra.gmra.mrb[8].mxu1 %vm105_vm1, %v816_v45  ;;  %2980 = vmatprep.subr.bf16.mxu0 %v3273_v0 }
 0x307   :  { %2970 = vmatpush3.bf16.msra.mxu1 %v3430_v17  ;;  %2594 = vmatprep.mubr.msk.f32.mxu1 %vm3274_vm0, %v3275_v1 }
 0x308   :  { %2576 = vmatmul.mubr.msk.f32.vlgmr.msra.gmra.mrb[16].mxu0 %vm105_vm1, %v816_v45  ;;  %2971 = vmatprep.subr.bf16.mxu1 %v3273_v0 }
 0x309   :  { %2982 = vmatpush3.bf16.msra.mxu0 %v3468_v40  ;;  %2613 = vmatprep.mubr.msk.f32.mxu0 %vm3274_vm0, %v3275_v1 }
 0x30a   :  { %2983 = vmatprep.subr.bf16.mxu0 %v3273_v0 }
 0x30b   :  { %2973 = vmatpush3.bf16.msra.mxu1 %v3437_v24 }
 0x30c   :  { %2974 = vmatprep.subr.bf16.mxu1 %v3273_v0 }
 0x30d   :  { %2985 = vmatpush3.bf16.msra.mxu0 %v3475_v44 }
 0x30e   :  { %2986 = vmatprep.subr.bf16.mxu0 %v3273_v0 }
 0x30f   :  { %2976 = vmatpush3.bf16.msra.mxu1 %v3447_v31 }
 0x310   :  { %2977 = vmatprep.subr.bf16.mxu1 %v3273_v0 }
 0x311   :  { %2988 = vmatpush3.bf16.msra.mxu0 %v3480_v47 }
 0x312   :  { %2989 = vmatprep.subr.bf16.mxu0 %v3273_v0 }
 0x313   :  { %2979 = vmatpush3.bf16.msra.mxu1 %v3455_v37 }
 0x314   :  { %2992 = vmatprep.subr.bf16.mxu1 %v3273_v0 }
 0x315   :  { %2991 = vmatpush3.bf16.msra.mxu0 %v3489_v50 }
 0x316   :  { %3004 = vmatprep.subr.bf16.mxu0 %v3273_v0 }
 0x3cb   :  { %v886_v46 = vpop.f32.mrb[14].mxu0 }
 0x3cc   :  { %v2539_v48 = vpop.f32.mrb[15].mxu0 }
 0x3d9   :  { %v959_v49 = vpop.f32.mrb[8].mxu1 }
 0x3da   :  { %v960_v51 = vadd.f32 %v959_v49, %v886_v46  ;;  %v2558_v52 = vpop.f32.mrb[9].mxu1 }
 0x3db   :  { %v1033_v54 = vpop.f32.mrb[16].mxu0  ;;  %v2144_v52 = vld [vmem:[%s3758_s7] ss:$0 sm:$0xff] }
 0x3dc   :  { %v963_v55 = vadd.f32 %v3531_v15, %v960_v51  ;;  %v1037_v56 = vadd.f32 %v1033_v54, %v966_v53  ;;  %v2577_v57 = vpop.f32.mrb[17].mxu0 }
 0x3de   :  { %v964_v58 = vmax.f32 %v963_v55, 0.0  ;;  %v1038_v59 = vmax.f32 %v1037_v56, 0.0  ;;  %v2093_v56 = vstv %s3759_s8 }
 0x3e0   :  { %2595 = vmatmul.mubr.msk.f32.vlgmr.msra.gmra.mrb[10].mxu1 %vm105_vm1, %v964_v58  ;;  %2614 = vmatmul.mubr.msk.f32.vlgmr.msra.gmra.mrb[18].mxu0 %vm105_vm1, %v1038_v59 }
 0x3e1   :  { %2994 = vmatpush3.bf16.msra.mxu1 %v3422_v8  ;;  %2632 = vmatprep.mubr.msk.f32.mxu1 %vm3274_vm0, %v3275_v1 }
 0x3e2   :  { %2995 = vmatprep.subr.bf16.mxu1 %v3273_v0  ;;  %3006 = vmatpush3.bf16.msra.mxu0 %v3430_v17 }
 0x3e3   :  { %3007 = vmatprep.subr.bf16.mxu0 %v3273_v0  ;;  %2651 = vmatprep.mubr.msk.f32.mxu0 %vm3274_vm0, %v3275_v1 }
 0x3e5   :  { %2997 = vmatpush3.bf16.msra.mxu1 %v3426_v12 }
 0x3e6   :  { %2998 = vmatprep.subr.bf16.mxu1 %v3273_v0  ;;  %3009 = vmatpush3.bf16.msra.mxu0 %v3437_v24 }
 0x3e7   :  { %3010 = vmatprep.subr.bf16.mxu0 %v3273_v0 }
 0x3e9   :  { %3000 = vmatpush3.bf16.msra.mxu1 %v3434_v21 }
 0x3ea   :  { %3001 = vmatprep.subr.bf16.mxu1 %v3273_v0  ;;  %3012 = vmatpush3.bf16.msra.mxu0 %v3447_v31 }
 0x3eb   :  { %3013 = vmatprep.subr.bf16.mxu0 %v3273_v0 }
 0x3ed   :  { %3003 = vmatpush3.bf16.msra.mxu1 %v3444_v29 }
 0x3ee   :  { %3015 = vmatpush3.bf16.msra.mxu0 %v3455_v37  ;;  %3016 = vmatprep.subr.bf16.mxu1 %v3273_v0 }
 0x3ef   :  { %3028 = vmatprep.subr.bf16.mxu0 %v3273_v0 }
 0x3f0   :  { %2633 = vmatmul.mubr.msk.f32.vlgmr.msra.gmra.mrb[12].mxu1 %vm105_vm1, %v1038_v59 }
 0x3f1   :  { %3018 = vmatpush3.bf16.msra.mxu1 %v3468_v40  ;;  %2670 = vmatprep.mubr.msk.f32.mxu1 %vm3274_vm0, %v3275_v1 }
 0x3f2   :  { %3019 = vmatprep.subr.bf16.mxu1 %v3273_v0 }
 0x3f5   :  { %3021 = vmatpush3.bf16.msra.mxu1 %v3475_v44 }
 0x3f6   :  { %3022 = vmatprep.subr.bf16.mxu1 %v3273_v0 }
 0x3f9   :  { %3024 = vmatpush3.bf16.msra.mxu1 %v3480_v47 }
 0x3fa   :  { %3025 = vmatprep.subr.bf16.mxu1 %v3273_v0 }
 0x3fd   :  { %3027 = vmatpush3.bf16.msra.mxu1 %v3489_v50 }
 0x3fe   :  { %3040 = vmatprep.subr.bf16.mxu1 %v3273_v0 }
 0x4b3   :  { %v1108_v60 = vpop.f32.mrb[10].mxu1  ;;  %v1181_v61 = vpop.f32.mrb[18].mxu0 }
 0x4b4   :  { %v1182_v62 = vadd.f32 %v1181_v61, %v1108_v60  ;;  %v2596_v63 = vpop.f32.mrb[11].mxu1  ;;  %v2615_v2 = vpop.f32.mrb[19].mxu0 }
 0x4b6   :  { %v1185_v3 = vadd.f32 %v3531_v15, %v1182_v62 }
 0x4b8   :  { %v1186_v4 = vmax.f32 %v1185_v3, 0.0 }
 0x4ba   :  { %2652 = vmatmul.mubr.msk.f32.vlgmr.msra.gmra.mrb[20].mxu0 %vm105_vm1, %v1186_v4 }
 0x4bb   :  { %3030 = vmatpush3.bf16.msra.mxu0 %v3422_v8  ;;  %2689 = vmatprep.mubr.msk.f32.mxu0 %vm3274_vm0, %v3275_v1 }
 0x4bc   :  { %3031 = vmatprep.subr.bf16.mxu0 %v3273_v0 }
 0x4bf   :  { %3033 = vmatpush3.bf16.msra.mxu0 %v3426_v12 }
 0x4c0   :  { %3034 = vmatprep.subr.bf16.mxu0 %v3273_v0 }
 0x4c3   :  { %v1255_v6 = vpop.f32.mrb[12].mxu1  ;;  %3036 = vmatpush3.bf16.msra.mxu0 %v3434_v21 }
 0x4c4   :  { %v1259_v7 = vadd.f32 %v1255_v6, %v1188_v5  ;;  %v2634_v9 = vpop.f32.mrb[13].mxu1  ;;  %3037 = vmatprep.subr.bf16.mxu0 %v3273_v0 }
 0x4c6   :  { %v1260_v10 = vmax.f32 %v1259_v7, 0.0 }
 0x4c7   :  { %3039 = vmatpush3.bf16.msra.mxu0 %v3444_v29 }
 0x4c8   :  { %2671 = vmatmul.mubr.msk.f32.vlgmr.msra.gmra.mrb[14].mxu1 %vm105_vm1, %v1260_v10  ;;  %3052 = vmatprep.subr.bf16.mxu0 %v3273_v0 }
 0x4c9   :  { %3042 = vmatpush3.bf16.msra.mxu1 %v3430_v17  ;;  %2708 = vmatprep.mubr.msk.f32.mxu1 %vm3274_vm0, %v3275_v1 }
 0x4ca   :  { %2690 = vmatmul.mubr.msk.f32.vlgmr.msra.gmra.mrb[22].mxu0 %vm105_vm1, %v1260_v10  ;;  %3043 = vmatprep.subr.bf16.mxu1 %v3273_v0 }
 0x4cb   :  { %3054 = vmatpush3.bf16.msra.mxu0 %v3468_v40  ;;  %2727 = vmatprep.mubr.msk.f32.mxu0 %vm3274_vm0, %v3275_v1 }
 0x4cc   :  { %3055 = vmatprep.subr.bf16.mxu0 %v3273_v0 }
 0x4cd   :  { %3045 = vmatpush3.bf16.msra.mxu1 %v3437_v24 }
 0x4ce   :  { %3046 = vmatprep.subr.bf16.mxu1 %v3273_v0 }
 0x4cf   :  { %3057 = vmatpush3.bf16.msra.mxu0 %v3475_v44 }
 0x4d0   :  { %3058 = vmatprep.subr.bf16.mxu0 %v3273_v0 }
 0x4d1   :  { %3048 = vmatpush3.bf16.msra.mxu1 %v3447_v31 }
 0x4d2   :  { %3049 = vmatprep.subr.bf16.mxu1 %v3273_v0 }
 0x4d3   :  { %3060 = vmatpush3.bf16.msra.mxu0 %v3480_v47 }
 0x4d4   :  { %3061 = vmatprep.subr.bf16.mxu0 %v3273_v0 }
 0x4d5   :  { %3051 = vmatpush3.bf16.msra.mxu1 %v3455_v37 }
 0x4d6   :  { %3064 = vmatprep.subr.bf16.mxu1 %v3273_v0 }
 0x4d7   :  { %3063 = vmatpush3.bf16.msra.mxu0 %v3489_v50 }
 0x4d8   :  { %3076 = vmatprep.subr.bf16.mxu0 %v3273_v0 }
 0x58d   :  { %v1330_v11 = vpop.f32.mrb[20].mxu0 }
 0x58e   :  { %v2653_v13 = vpop.f32.mrb[21].mxu0 }
 0x59b   :  { %v1403_v14 = vpop.f32.mrb[14].mxu1 }
 0x59c   :  { %v1404_v16 = vadd.f32 %v1403_v14, %v1330_v11  ;;  %v2672_v18 = vpop.f32.mrb[15].mxu1 }
 0x59d   :  { %v1477_v20 = vpop.f32.mrb[22].mxu0 }
 0x59e   :  { %v1407_v22 = vadd.f32 %v3531_v15, %v1404_v16  ;;  %v1481_v23 = vadd.f32 %v1477_v20, %v1410_v19  ;;  %v2691_v25 = vpop.f32.mrb[23].mxu0 }
 0x5a0   :  { %v1408_v26 = vmax.f32 %v1407_v22, 0.0  ;;  %v1482_v27 = vmax.f32 %v1481_v23, 0.0 }
 0x5a2   :  { %2709 = vmatmul.mubr.msk.f32.vlgmr.msra.gmra.mrb[16].mxu1 %vm105_vm1, %v1408_v26  ;;  %2728 = vmatmul.mubr.msk.f32.vlgmr.msra.gmra.mrb[24].mxu0 %vm105_vm1, %v1482_v27 }
 0x5a3   :  { %3066 = vmatpush3.bf16.msra.mxu1 %v3422_v8  ;;  %2746 = vmatprep.mubr.msk.f32.mxu1 %vm3274_vm0, %v3275_v1 }
 0x5a4   :  { %3067 = vmatprep.subr.bf16.mxu1 %v3273_v0  ;;  %3078 = vmatpush3.bf16.msra.mxu0 %v3430_v17 }
 0x5a5   :  { %3079 = vmatprep.subr.bf16.mxu0 %v3273_v0  ;;  %2765 = vmatprep.mubr.msk.f32.mxu0 %vm3274_vm0, %v3275_v1 }
 0x5a7   :  { %3069 = vmatpush3.bf16.msra.mxu1 %v3426_v12 }
 0x5a8   :  { %3070 = vmatprep.subr.bf16.mxu1 %v3273_v0  ;;  %3081 = vmatpush3.bf16.msra.mxu0 %v3437_v24 }
 0x5a9   :  { %3082 = vmatprep.subr.bf16.mxu0 %v3273_v0 }
 0x5ab   :  { %3072 = vmatpush3.bf16.msra.mxu1 %v3434_v21 }
 0x5ac   :  { %3073 = vmatprep.subr.bf16.mxu1 %v3273_v0  ;;  %3084 = vmatpush3.bf16.msra.mxu0 %v3447_v31 }
 0x5ad   :  { %3085 = vmatprep.subr.bf16.mxu0 %v3273_v0 }
 0x5af   :  { %3075 = vmatpush3.bf16.msra.mxu1 %v3444_v29 }
 0x5b0   :  { %3087 = vmatpush3.bf16.msra.mxu0 %v3455_v37  ;;  %3088 = vmatprep.subr.bf16.mxu1 %v3273_v0 }
 0x5b1   :  { %3100 = vmatprep.subr.bf16.mxu0 %v3273_v0 }
 0x5b2   :  { %2747 = vmatmul.mubr.msk.f32.vlgmr.msra.gmra.mrb[18].mxu1 %vm105_vm1, %v1482_v27 }
 0x5b3   :  { %3090 = vmatpush3.bf16.msra.mxu1 %v3468_v40  ;;  %2784 = vmatprep.mubr.msk.f32.mxu1 %vm3274_vm0, %v3275_v1 }
 0x5b4   :  { %3091 = vmatprep.subr.bf16.mxu1 %v3273_v0 }
 0x5b7   :  { %3093 = vmatpush3.bf16.msra.mxu1 %v3475_v44 }
 0x5b8   :  { %3094 = vmatprep.subr.bf16.mxu1 %v3273_v0 }
 0x5bb   :  { %3096 = vmatpush3.bf16.msra.mxu1 %v3480_v47 }
 0x5bc   :  { %3097 = vmatprep.subr.bf16.mxu1 %v3273_v0 }
 0x5bf   :  { %3099 = vmatpush3.bf16.msra.mxu1 %v3489_v50 }
 0x5c0   :  { %3112 = vmatprep.subr.bf16.mxu1 %v3273_v0 }
 0x675   :  { %v1552_v28 = vpop.f32.mrb[16].mxu1  ;;  %v1625_v30 = vpop.f32.mrb[24].mxu0 }
 0x676   :  { %v1626_v32 = vadd.f32 %v1625_v30, %v1552_v28  ;;  %v2710_v33 = vpop.f32.mrb[17].mxu1  ;;  %v2729_v34 = vpop.f32.mrb[25].mxu0 }
 0x678   :  { %v1629_v35 = vadd.f32 %v3531_v15, %v1626_v32 }
 0x67a   :  { %v1630_v36 = vmax.f32 %v1629_v35, 0.0 }
 0x67c   :  { %2766 = vmatmul.mubr.msk.f32.vlgmr.msra.gmra.mrb[26].mxu0 %vm105_vm1, %v1630_v36 }
 0x67d   :  { %3102 = vmatpush3.bf16.msra.mxu0 %v3422_v8  ;;  %2803 = vmatprep.mubr.msk.f32.mxu0 %vm3274_vm0, %v3275_v1 }
 0x67e   :  { %3103 = vmatprep.subr.bf16.mxu0 %v3273_v0 }
 0x681   :  { %3105 = vmatpush3.bf16.msra.mxu0 %v3426_v12 }
 0x682   :  { %3106 = vmatprep.subr.bf16.mxu0 %v3273_v0 }
 0x685   :  { %v1699_v39 = vpop.f32.mrb[18].mxu1  ;;  %3108 = vmatpush3.bf16.msra.mxu0 %v3434_v21 }
 0x686   :  { %v1703_v41 = vadd.f32 %v1699_v39, %v1632_v38  ;;  %v2748_v42 = vpop.f32.mrb[19].mxu1  ;;  %3109 = vmatprep.subr.bf16.mxu0 %v3273_v0 }
 0x688   :  { %v1704_v43 = vmax.f32 %v1703_v41, 0.0 }
 0x689   :  { %3111 = vmatpush3.bf16.msra.mxu0 %v3444_v29 }
 0x68a   :  { %2785 = vmatmul.mubr.msk.f32.vlgmr.msra.gmra.mrb[20].mxu1 %vm105_vm1, %v1704_v43  ;;  %3124 = vmatprep.subr.bf16.mxu0 %v3273_v0 }
 0x68b   :  { %3114 = vmatpush3.bf16.msra.mxu1 %v3430_v17  ;;  %2822 = vmatprep.mubr.msk.f32.mxu1 %vm3274_vm0, %v3275_v1 }
 0x68c   :  { %2804 = vmatmul.mubr.msk.f32.vlgmr.msra.gmra.mrb[28].mxu0 %vm105_vm1, %v1704_v43  ;;  %3115 = vmatprep.subr.bf16.mxu1 %v3273_v0 }
 0x68d   :  { %3126 = vmatpush3.bf16.msra.mxu0 %v3468_v40  ;;  %2841 = vmatprep.mubr.msk.f32.mxu0 %vm3274_vm0, %v3275_v1 }
 0x68e   :  { %3127 = vmatprep.subr.bf16.mxu0 %v3273_v0 }
 0x68f   :  { %3117 = vmatpush3.bf16.msra.mxu1 %v3437_v24  ;;  %v1854_v24 = vld [vmem:[#allocation2 + $0x38] sm:$0xff] }
 0x690   :  { %3118 = vmatprep.subr.bf16.mxu1 %v3273_v0 }
 0x691   :  { %3129 = vmatpush3.bf16.msra.mxu0 %v3475_v44 }
 0x692   :  { %3130 = vmatprep.subr.bf16.mxu0 %v3273_v0 }
 0x693   :  { %3120 = vmatpush3.bf16.msra.mxu1 %v3447_v31 }
 0x694   :  { %3121 = vmatprep.subr.bf16.mxu1 %v3273_v0 }
 0x695   :  { %3132 = vmatpush3.bf16.msra.mxu0 %v3480_v47 }
 0x696   :  { %3133 = vmatprep.subr.bf16.mxu0 %v3273_v0 }
 0x697   :  { %3123 = vmatpush3.bf16.msra.mxu1 %v3455_v37 }
 0x699   :  { %3135 = vmatpush3.bf16.msra.mxu0 %v3489_v50 }
 0x74f   :  { %v1774_v1 = vpop.f32.mrb[26].mxu0 }
 0x750   :  { %v2767_v8 = vpop.f32.mrb[27].mxu0 }
 0x75d   :  { %v1847_v12 = vpop.f32.mrb[20].mxu1 }
 0x75e   :  { %v1848_v17 = vadd.f32 %v1847_v12, %v1774_v1  ;;  %v2786_v21 = vpop.f32.mrb[21].mxu1 }
 0x75f   :  { %v1921_v29 = vpop.f32.mrb[28].mxu0 }
 0x760   :  { %v1851_v40 = vadd.f32 %v3531_v15, %v1848_v17  ;;  %v1925_v31 = vadd.f32 %v1921_v29, %v1854_v24  ;;  %v2805_v44 = vpop.f32.mrb[29].mxu0 }
 0x762   :  { %v1852_v45 = vmax.f32 %v1851_v40, 0.0  ;;  %v1926_v46 = vmax.f32 %v1925_v31, 0.0 }
 0x764   :  { %2075 = vst.msk [vmem:[#allocation3] sm:$0xff] %vm105_vm1, %v1926_v46  ;;  %2823 = vmatmul.mubr.msk.f32.vlgmr.msra.gmra.mrb[22].mxu1 %vm105_vm1, %v1852_v45  ;;  %2842 = vmatmul.mubr.msk.f32.vlgmr.msra.gmra.mrb[30].mxu0 %vm105_vm1, %v1926_v46 }
 0x837   :  { %v1996_v0 = vpop.f32.mrb[22].mxu1  ;;  %v2069_v37 = vpop.f32.mrb[30].mxu0 }
 0x838   :  { %v2070_v47 = vadd.f32 %v2069_v37, %v1996_v0  ;;  %v2824_v50 = vpop.f32.mrb[23].mxu1  ;;  %v2843_v48 = vpop.f32.mrb[31].mxu0 }
 0x83a   :  { %v2073_v49 = vadd.f32 %v3531_v15, %v2070_v47 }
 0x83c   :  { %v2074_v51 = vmax.f32 %v2073_v49, 0.0 }
 0x83e   :  { %2076 = vst.msk [vmem:[#allocation4] sm:$0xff] %vm105_vm1, %v2074_v51 }
 0x845   :  { %v2080_v53 = vld [vmem:[#allocation4] sm:$0xff] }
 0x846   :  { %v2088_v54 = vmul.f32 %v2144_v52, %v2080_v53 }
 0x848   :  { %v2089_v55 = vsel %vm105_vm1, %v2088_v54, 0.0 }
 0x849   :  { %2090 = vadd.xlane.f32.xlu0 %v2089_v55 }
 0x8d6   :  { %v2091_v57 = vpop.xlane.xlu0 %2090 }
 0x8d7   :  { %v2094_v58 = vadd.f32 %v2093_v56, %v2091_v57 }
 0x8d9   :  { %v2145_v59 = vmul.f32 -1.442695, %v2094_v58 }
 0x8db   :  { %3146 = vpow2.f32 %v2145_v59 }
 0x8e5   :  { %v3147_v15 = vpop.eup %3146 }
 0x8e6   :  { %v2098_v60 = vadd.f32 1.0, %v3147_v15 }
 0x8e8   :  { %3148 = vrcp.f32 %v2098_v60 }
 0x8f2   :  { %v3149_v61 = vpop.eup %3148 }
 0x8f3   :  { %2102 = vst.msk [vmem:[%s3760_s9] sm:$0xff] %vm2101_vm3, %v3149_v61 }
 0x8f4   :  { %2107 = vsyncpa [#allocation7], 1 }
 0x8f5   :  { %2108 = vsyncpa [#allocation9], 1 }
 0x8f6   :  { %2109 = vsyncpa [#allocation12], 1 }

</bundles_post_ra>
